<compile_context>
chip_gen: v7x
topology: tpu7x:2x2x1
jax: 0.10.0
libtpu: 0.0.40
codegen_flags: <defaults>
</compile_context>

<pallas_src>
import functools

import jax
import jax.numpy as jnp
from jax import lax
from jax.experimental import pallas as pl
from jax.experimental.pallas import tpu as pltpu


_TILE_N_MAX = 1024   # rows per grid step (few-MiB VMEM/tile on every TPU gen)
_SPLIT_ROWS = 256    # once N >= this, force >= 2 tiles so v7x's 2 TCs both work


def _round_up(x, m):
    return (x + m - 1) // m * m


def _tiling(n):
    """Balanced tiles: minimal padding, >=2 tiles when there is enough work."""
    n = max(n, 1)
    num_tiles = pl.cdiv(n, _TILE_N_MAX)
    if n >= _SPLIT_ROWS:
        num_tiles = max(num_tiles, 2)
    tile_n = _round_up(pl.cdiv(n, num_tiles), 8)
    n_pad = tile_n * num_tiles
    return tile_n, n_pad, num_tiles


def _flat_ids(x, n, n_pad):
    x = x.reshape(n).astype(jnp.int32)
    if n_pad != n:
        x = jnp.pad(x, (0, n_pad - n))          # pad with token 0 (masked later)
    return x.reshape(n_pad, 1)


def _gather_logits(ids, table_ref, tile_n, vocab):
    """Embedding lookup as a one-hot matmul on the MXU (exact f32)."""
    vocab_iota = lax.broadcasted_iota(jnp.int32, (tile_n, vocab), 1)
    onehot = (vocab_iota == ids).astype(jnp.float32)               # (tile_n, V)
    logits = jnp.dot(onehot, table_ref[...],
                     preferred_element_type=jnp.float32,
                     precision=lax.Precision.HIGHEST)              # (tile_n, V)
    return logits, vocab_iota


def _tile_ce_sum(logits, tgt, vocab_iota, n_valid, tile_n):
    """Sum of per-row cross entropy over this tile (padded rows -> exact 0)."""
    row_max = jnp.max(logits, axis=-1, keepdims=True)              # (tile_n, 1)
    lse = jnp.log(jnp.sum(jnp.exp(logits - row_max),
                          axis=-1, keepdims=True)) + row_max       # (tile_n, 1)
    tgt_logit = jnp.sum(jnp.where(vocab_iota == tgt, logits, 0.0),
                        axis=-1, keepdims=True)                    # (tile_n, 1)
    row_ids = (pl.program_id(0) * tile_n
               + lax.broadcasted_iota(jnp.int32, (tile_n, 1), 0))
    ce_rows = jnp.where(row_ids < n_valid, lse - tgt_logit, 0.0)
    return jnp.sum(ce_rows)                                        # scalar


def _store_tile_sum(ce_ref, tile_sum):
    """Write the tile scalar into a lane-dense (1, 8, 128) block.

    Scalar lives at [0, 0, 0]; every other element is an exact zero so the
    wrapper can simply sum all blocks.  Full-width stores avoid vst.msk.
    """
    shp = ce_ref.shape
    r = lax.broadcasted_iota(jnp.int32, shp, 1)
    c = lax.broadcasted_iota(jnp.int32, shp, 2)
    ce_ref[...] = jnp.where((r == 0) & (c == 0), tile_sum, 0.0)


def _train_kernel(tok_ref, table_ref, logits_ref, ce_ref, *, n_valid):
    tile_n, vocab = logits_ref.shape
    tok = tok_ref[...]                     # (tile_n, 2): [:,0]=idx, [:,1]=target
    ids, tgt = tok[:, 0:1], tok[:, 1:2]
    logits, vocab_iota = _gather_logits(ids, table_ref, tile_n, vocab)
    logits_ref[...] = logits
    _store_tile_sum(ce_ref, _tile_ce_sum(logits, tgt, vocab_iota, n_valid, tile_n))


def _loss_only_kernel(tok_ref, table_ref, ce_ref, *, n_valid):
    tile_n = tok_ref.shape[0]
    vocab = table_ref.shape[1]
    tok = tok_ref[...]
    ids, tgt = tok[:, 0:1], tok[:, 1:2]
    logits, vocab_iota = _gather_logits(ids, table_ref, tile_n, vocab)
    _store_tile_sum(ce_ref, _tile_ce_sum(logits, tgt, vocab_iota, n_valid, tile_n))


def _infer_kernel(idx_ref, table_ref, logits_ref):
    tile_n, vocab = logits_ref.shape
    logits, _ = _gather_logits(idx_ref[...], table_ref, tile_n, vocab)
    logits_ref[...] = logits


def _specs(tile_n, V):
    parallel = pltpu.CompilerParams(dimension_semantics=("parallel",))
    tok_spec = pl.BlockSpec((tile_n, 2), lambda i: (i, 0))
    idx_spec = pl.BlockSpec((tile_n, 1), lambda i: (i, 0))
    table_spec = pl.BlockSpec((V, V), lambda i: (0, 0))        # resident, 1 fetch
    logits_spec = pl.BlockSpec((tile_n, V), lambda i: (i, 0))
    ce_spec = pl.BlockSpec((1, 8, 128), lambda i: (i, 0, 0))   # per-tile scalar
    return parallel, tok_spec, idx_spec, table_spec, logits_spec, ce_spec


def bigram_forward(idx, targets, table):
    """idx, targets: (B, T) int; table: (V, V) float32.

    Returns (logits, loss):
      * with targets:   logits (B*T, V) (matches torch's .view), scalar loss
      * without targets: logits (B, T, V), loss None
    """
    B, T = idx.shape
    V = table.shape[0]
    N = B * T
    tile_n, n_pad, num_tiles = _tiling(N)
    parallel, tok_spec, idx_spec, table_spec, logits_spec, ce_spec = _specs(tile_n, V)

    if targets is None:
        # Inference: no target input, no cross-entropy math.
        idx_pad = _flat_ids(idx, N, n_pad)
        logits_pad = pl.pallas_call(
            _infer_kernel,
            out_shape=jax.ShapeDtypeStruct((n_pad, V), jnp.float32),
            grid_spec=pltpu.PrefetchScalarGridSpec(
                num_scalar_prefetch=0,
                grid=(num_tiles,),
                in_specs=[idx_spec, table_spec],
                out_specs=logits_spec),
            compiler_params=parallel,
        )(idx_pad, table)
        return logits_pad[:N].reshape(B, T, V), None

    tok = jnp.concatenate([_flat_ids(idx, N, n_pad),
                           _flat_ids(targets, N, n_pad)], axis=1)   # (n_pad, 2)
    logits_pad, ce = pl.pallas_call(
        functools.partial(_train_kernel, n_valid=N),
        out_shape=(jax.ShapeDtypeStruct((n_pad, V), jnp.float32),
                   jax.ShapeDtypeStruct((num_tiles, 8, 128), jnp.float32)),
        grid_spec=pltpu.PrefetchScalarGridSpec(
            num_scalar_prefetch=0,
            grid=(num_tiles,),
            in_specs=[tok_spec, table_spec],
            out_specs=[logits_spec, ce_spec]),
        compiler_params=parallel,
    )(tok, table)
    loss = jnp.sum(ce) / N          # padded rows / lanes are exact zeros
    return logits_pad[:N], loss


def bigram_loss(idx, targets, table):
    """Training-step helper: scalar mean CE only (no (N, V) logits writeback)."""
    B, T = idx.shape
    V = table.shape[0]
    N = B * T
    tile_n, n_pad, num_tiles = _tiling(N)
    parallel, tok_spec, _, table_spec, _, ce_spec = _specs(tile_n, V)
    tok = jnp.concatenate([_flat_ids(idx, N, n_pad),
                           _flat_ids(targets, N, n_pad)], axis=1)
    ce = pl.pallas_call(
        functools.partial(_loss_only_kernel, n_valid=N),
        out_shape=jax.ShapeDtypeStruct((num_tiles, 8, 128), jnp.float32),
        grid_spec=pltpu.PrefetchScalarGridSpec(
            num_scalar_prefetch=0,
            grid=(num_tiles,),
            in_specs=[tok_spec, table_spec],
            out_specs=ce_spec),
        compiler_params=parallel,
    )(tok, table)
    return jnp.sum(ce) / N


def _reference_forward(idx, targets, table):
    """Pure-JAX reference (mirrors the PyTorch module)."""
    logits = table[idx]                                   # (B, T, V)
    B, T, V = logits.shape
    logits2 = logits.reshape(B * T, V)
    t = targets.reshape(B * T)
    lse = jax.nn.logsumexp(logits2, axis=-1)
    tgt_logit = jnp.take_along_axis(logits2, t[:, None], axis=-1)[:, 0]
    return logits2, jnp.mean(lse - tgt_logit)


if __name__ == "__main__":
    vocab_size = 128   # V (lane-friendly)
    B, T = 2, 8        # small shapes consistent with the module

    key = jax.random.PRNGKey(0)
    k_table, k_idx, k_tgt, k_idx2, k_tgt2, k_idx3, k_tgt3 = jax.random.split(key, 7)

    # nn.Embedding(vocab_size, vocab_size) default init ~ N(0, 1).
    table = jax.random.normal(k_table, (vocab_size, vocab_size), dtype=jnp.float32)
    idx = jax.random.randint(k_idx, (B, T), 0, vocab_size, dtype=jnp.int32)
    targets = jax.random.randint(k_tgt, (B, T), 0, vocab_size, dtype=jnp.int32)

    # --- training path: logits + loss (single small tile) ---
    logits, loss = bigram_forward(idx, targets, table)
    logits = jax.block_until_ready(logits)
    loss = jax.block_until_ready(loss)
    ref_logits, ref_loss = _reference_forward(idx, targets, table)
    assert logits.shape == (B * T, vocab_size)
    assert jnp.allclose(logits, ref_logits, atol=1e-5, rtol=1e-5)
    assert jnp.allclose(loss, ref_loss, atol=1e-4, rtol=1e-4)

    # --- inference path: no targets, no CE math ---
    logits3, loss_none = bigram_forward(idx, None, table)
    logits3 = jax.block_until_ready(logits3)
    assert loss_none is None
    assert logits3.shape == (B, T, vocab_size)
    assert jnp.allclose(logits3.reshape(B * T, vocab_size), ref_logits,
                        atol=1e-5, rtol=1e-5)

    # --- loss-only path: skips the (N, V) logits writeback ---
    loss2 = jax.block_until_ready(bigram_loss(idx, targets, table))
    assert jnp.allclose(loss2, ref_loss, atol=1e-4, rtol=1e-4)

    # --- multi-tile balanced path: N = 1200 -> 2 tiles of 600, no padding ---
    B2, T2 = 4, 300
    idx_big = jax.random.randint(k_idx2, (B2, T2), 0, vocab_size, dtype=jnp.int32)
    tgt_big = jax.random.randint(k_tgt2, (B2, T2), 0, vocab_size, dtype=jnp.int32)
    logits_big, loss_big = bigram_forward(idx_big, tgt_big, table)
    logits_big = jax.block_until_ready(logits_big)
    loss_big = jax.block_until_ready(loss_big)
    ref_logits_big, ref_loss_big = _reference_forward(idx_big, tgt_big, table)
    assert logits_big.shape == (B2 * T2, vocab_size)
    assert jnp.allclose(logits_big, ref_logits_big, atol=1e-5, rtol=1e-5)
    assert jnp.allclose(loss_big, ref_loss_big, atol=1e-4, rtol=1e-4)

    # --- ragged path: N = 201 (not a multiple of 8) -> masked padded rows ---
    B3, T3 = 3, 67
    idx_rag = jax.random.randint(k_idx3, (B3, T3), 0, vocab_size, dtype=jnp.int32)
    tgt_rag = jax.random.randint(k_tgt3, (B3, T3), 0, vocab_size, dtype=jnp.int32)
    logits_rag, loss_rag = bigram_forward(idx_rag, tgt_rag, table)
    logits_rag = jax.block_until_ready(logits_rag)
    loss_rag = jax.block_until_ready(loss_rag)
    ref_logits_rag, ref_loss_rag = _reference_forward(idx_rag, tgt_rag, table)
    assert logits_rag.shape == (B3 * T3, vocab_size)
    assert jnp.allclose(logits_rag, ref_logits_rag, atol=1e-5, rtol=1e-5)
    assert jnp.allclose(loss_rag, ref_loss_rag, atol=1e-4, rtol=1e-4)
    assert jnp.allclose(jax.block_until_ready(bigram_loss(idx_rag, tgt_rag, table)),
                        ref_loss_rag, atol=1e-4, rtol=1e-4)

    print("KERNEL_OK")
</pallas_src>

<mosaic_0001>
module attributes {stable_mosaic.version = 11 : i64} {
  func.func @_train_kernel(%arg0: i32, %arg1: memref<16x2xi32, #tpu.memory_space<vmem>>, %arg2: memref<128x128xf32, #tpu.memory_space<vmem>>, %arg3: memref<16x128xf32, #tpu.memory_space<vmem>>, %arg4: memref<1x8x128xf32, #tpu.memory_space<vmem>>) attributes {dimension_semantics = [#tpu.dimension_semantics<parallel>], iteration_bounds = array<i64: 1>, scalar_prefetch = 0 : i64, scratch_operands = 0 : i64, tpu.core_type = #tpu.core_type<tc>, window_params = [{transform_indices = @transform_0, window_bounds = array<i64: 16, 2>}, {pipeline_mode = #tpu.pipeline_mode<synchronous>, transform_indices = @transform_1, window_bounds = array<i64: 128, 128>}, {transform_indices = @transform_2, window_bounds = array<i64: 16, 128>}, {transform_indices = @transform_3, window_bounds = array<i64: 1, 8, 128>}]} {
    %c0 = arith.constant 0 : index
    %c0_0 = arith.constant 0 : index
    %0 = vector.load %arg1[%c0, %c0_0] : memref<16x2xi32, #tpu.memory_space<vmem>>, vector<16x2xi32>
    %1 = vector.extract_strided_slice %0 {offsets = [0, 0], sizes = [16, 1], strides = [1, 1]} : vector<16x2xi32> to vector<16x1xi32>
    %2 = vector.extract_strided_slice %0 {offsets = [0, 1], sizes = [16, 1], strides = [1, 1]} : vector<16x2xi32> to vector<16x1xi32>
    %3 = tpu.iota {dimensions = array<i32: 1>} : vector<16x128xi32>
    %4 = vector.broadcast %1 : vector<16x1xi32> to vector<16x128xi32>
    %5 = arith.cmpi eq, %3, %4 : vector<16x128xi32>
    %6 = arith.extui %5 : vector<16x128xi1> to vector<16x128xi32>
    %7 = arith.sitofp %6 : vector<16x128xi32> to vector<16x128xf32>
    %c0_1 = arith.constant 0 : index
    %c0_2 = arith.constant 0 : index
    %8 = vector.load %arg2[%c0_1, %c0_2] : memref<128x128xf32, #tpu.memory_space<vmem>>, vector<128x128xf32>
    %cst = arith.constant dense<0.000000e+00> : vector<16x128xf32>
    %9 = tpu.matmul %7, %8, %cst {dimension_numbers = #tpu.dot_dimension_numbers<[1], [0], [0], [1], [0, 0, 1, 1], [], []>, precision = #tpu.contract_precision<fp32>} : vector<16x128xf32>, vector<128x128xf32>, vector<16x128xf32> -> vector<16x128xf32>
    %c0_3 = arith.constant 0 : index
    %c0_4 = arith.constant 0 : index
    %10 = vector.load %arg3[%c0_3, %c0_4] : memref<16x128xf32, #tpu.memory_space<vmem>>, vector<16x128xf32>
    tpu.vector_store %arg3[%c0_3, %c0_4], %9 {strides = array<i32>} : memref<16x128xf32, #tpu.memory_space<vmem>>, vector<16x128xf32>,
    %cst_5 = arith.constant dense<0xFF800000> : vector<16xf32>
    %11 = vector.multi_reduction <maximumf>, %9, %cst_5 [1] : vector<16x128xf32> to vector<16xf32>
    %12 = vector.shape_cast %11 : vector<16xf32> to vector<16x1xf32>
    %13 = vector.broadcast %12 : vector<16x1xf32> to vector<16x128xf32>
    %14 = arith.subf %9, %13 : vector<16x128xf32>
    %15 = math.exp %14 : vector<16x128xf32>
    %cst_6 = arith.constant dense<0.000000e+00> : vector<16xf32>
    %16 = vector.multi_reduction <add>, %15, %cst_6 [1] : vector<16x128xf32> to vector<16xf32>
    %17 = vector.shape_cast %16 : vector<16xf32> to vector<16x1xf32>
    %18 = math.log %17 : vector<16x1xf32>
    %19 = arith.addf %18, %12 : vector<16x1xf32>
    %20 = vector.broadcast %2 : vector<16x1xi32> to vector<16x128xi32>
    %21 = arith.cmpi eq, %3, %20 : vector<16x128xi32>
    %cst_7 = arith.constant 0.000000e+00 : f32
    %22 = vector.broadcast %cst_7 : f32 to vector<16x128xf32>
    %23 = arith.select %21, %9, %22 : vector<16x128xi1>, vector<16x128xf32>
    %cst_8 = arith.constant dense<0.000000e+00> : vector<16xf32>
    %24 = vector.multi_reduction <add>, %23, %cst_8 [1] : vector<16x128xf32> to vector<16xf32>
    %25 = vector.shape_cast %24 : vector<16xf32> to vector<16x1xf32>
    %c16_i32 = arith.constant 16 : i32
    %26 = arith.muli %arg0, %c16_i32 : i32
    %27 = tpu.iota {dimensions = array<i32: 0>} : vector<16x1xi32>
    %28 = vector.broadcast %26 : i32 to vector<16x1xi32>
    %29 = arith.addi %28, %27 : vector<16x1xi32>
    %c16_i32_9 = arith.constant 16 : i32
    %30 = vector.broadcast %c16_i32_9 : i32 to vector<16x1xi32>
    %31 = arith.cmpi slt, %29, %30 : vector<16x1xi32>
    %32 = arith.subf %19, %25 : vector<16x1xf32>
    %cst_10 = arith.constant 0.000000e+00 : f32
    %33 = vector.broadcast %cst_10 : f32 to vector<16x1xf32>
    %34 = arith.select %31, %32, %33 : vector<16x1xi1>, vector<16x1xf32>
    %35 = vector.shape_cast %34 : vector<16x1xf32> to vector<1x16x1xf32>
    %cst_11 = arith.constant dense<0.000000e+00> : vector<1xf32>
    %36 = vector.multi_reduction <add>, %35, %cst_11 [1, 2] : vector<1x16x1xf32> to vector<1xf32>
    %37 = vector.shape_cast %36 : vector<1xf32> to vector<1x1x1xf32>
    %38 = vector.extract %37[0, 0, 0] : f32 from vector<1x1x1xf32>
    %39 = tpu.iota {dimensions = array<i32: 1>} : vector<1x8x128xi32>
    %40 = tpu.iota {dimensions = array<i32: 2>} : vector<1x8x128xi32>
    %c0_i32 = arith.constant 0 : i32
    %41 = vector.broadcast %c0_i32 : i32 to vector<1x8x128xi32>
    %42 = arith.cmpi eq, %39, %41 : vector<1x8x128xi32>
    %c0_i32_12 = arith.constant 0 : i32
    %43 = vector.broadcast %c0_i32_12 : i32 to vector<1x8x128xi32>
    %44 = arith.cmpi eq, %40, %43 : vector<1x8x128xi32>
    %45 = arith.andi %42, %44 : vector<1x8x128xi1>
    %cst_13 = arith.constant 0.000000e+00 : f32
    %46 = vector.broadcast %38 : f32 to vector<1x8x128xf32>
    %47 = vector.broadcast %cst_13 : f32 to vector<1x8x128xf32>
    %48 = arith.select %45, %46, %47 : vector<1x8x128xi1>, vector<1x8x128xf32>
    %c0_14 = arith.constant 0 : index
    %c0_15 = arith.constant 0 : index
    %c0_16 = arith.constant 0 : index
    %49 = vector.load %arg4[%c0_14, %c0_15, %c0_16] : memref<1x8x128xf32, #tpu.memory_space<vmem>>, vector<1x8x128xf32>
    tpu.vector_store %arg4[%c0_14, %c0_15, %c0_16], %48 {strides = array<i32>} : memref<1x8x128xf32, #tpu.memory_space<vmem>>, vector<1x8x128xf32>,
    return
  }
  func.func @transform_0(%arg0: i32) -> (i32, i32) {
    %c0_i32 = arith.constant 0 : i32
    %c0_i32_0 = arith.constant 0 : i32
    return %arg0, %c0_i32 : i32, i32
  }
  func.func @transform_1(%arg0: i32) -> (i32, i32) {
    %c0_i32 = arith.constant 0 : i32
    %c0_i32_0 = arith.constant 0 : i32
    %c0_i32_1 = arith.constant 0 : i32
    return %c0_i32, %c0_i32_0 : i32, i32
  }
  func.func @transform_2(%arg0: i32) -> (i32, i32) {
    %c0_i32 = arith.constant 0 : i32
    %c0_i32_0 = arith.constant 0 : i32
    return %arg0, %c0_i32 : i32, i32
  }
  func.func @transform_3(%arg0: i32) -> (i32, i32, i32) {
    %c0_i32 = arith.constant 0 : i32
    %c0_i32_0 = arith.constant 0 : i32
    %c0_i32_1 = arith.constant 0 : i32
    return %arg0, %c0_i32, %c0_i32_0 : i32, i32, i32
  }
}

</mosaic_0001>

<bundles_post_ra>
// kernel: tpu_custom_call.1
= control target key start
LH: loop header
LB: loop body
LE: loop exit
PB: predicated region body
PF: predicated region fallthrough
CT: control target
= control target key end

     0   :  { %9 = vsyncpa [#allocation3], 0  ;;  %s1816_s0 = inlined_call_operand.vmem [shape: s32[16,2], index: 0, kind: input, shape index: {}]   ;;  %s1817_s1 = inlined_call_operand.hbm [shape: f32[128,128], index: 1, kind: input, shape index: {}]   ;;  %s1818_s2 = inlined_call_operand.hbm [shape: f32[16,128], index: 2, kind: output, shape index: {0}]   ;;  %s1819_s3 = inlined_call_operand.hbm [shape: f32[1,8,128], index: 3, kind: output, shape index: {1}]  }
   0x1   :  { %10 = vsyncpa [#allocation4], 0 }
   0x2   :  { %11 = vsyncpa [#allocation7], 0  ;;  %s1466_s12 = smov [#allocation2]   ;;  %s1394_s16 = scalar_lea.hbm %s1817_s1, 2048 }
   0x3   :  { %s19_s13 = sshll.u32 %s1466_s12, 4  ;;  %p1395_p0 = scmp.ne.s32.totalorder %s1817_s1, %s1394_s16  ;;  %s20_s13 = int_to_ptr.vmem [resolvable:$true] %s19_s13 }
   0x4   :  { %p1398_p1 = scmp.lt.u32.totalorder %s1394_s16, %s1817_s1 }
   0x6   :  { %p1400_p2 = pnand %p1398_p1, %p1395_p0 }
   0x8   :  { %1403 = shalt.err (!%p1400_p2)
}
   0x9   :  { %s1404_s21 = scalar_lea.vmem %s20_s13, 2048  ;;  %p1409_p4 = scmp.lt.s32.totalorder %s20_s13, %s20_s13 }
   0xa   :  { %p1405_p3 = scmp.ne.s32.totalorder %s20_s13, %s1404_s21  ;;  %p1410_p5 = scmp.lt.s32.totalorder %s1404_s21, %s1404_s21 }
   0xc   :  { %p1411_p6 = por %p1410_p5, %p1409_p4 }
   0xe   :  { %p1412_p7 = pnand %p1411_p6, %p1405_p3 }
  0x10   :  { %1415 = shalt.err (!%p1412_p7)
}
  0x11   :  { %s1467_s22 = smov 128   ;;  %s1468_s23 = smov 8  }
  0x12   :  { %25 = dma.hbm_to_vmem [thread:$0]  %s1817_s1, 2048, %s20_s13, [#allocation3], %s1467_s22, %s1467_s22, %s1468_s23  }
  0x13   :  { %1460 = dma.done.wait [#allocation3], 2048  }
  0x14   :  { %1461 = vsyncadd [#allocation3], 4294965248  ;;  %v1469_v0 = vmov 0   ;;  %v1513_v1 = vld [vmem:[%s1816_s0] sm:$0xff]  ;;  %v46_v3 = vld [vmem:[#allocation2 + $0x8] sm:$0xff]  ;;  %vm794_vm4 = vcmask 7168  }
  0x15   :  { %1383 = vset.pattern.permute.xlu0 %v1469_v0  ;;  %v45_v2 = vld [vmem:[#allocation2] sm:$0xff]  ;;  %v47_v5 = vld [vmem:[#allocation2 + $0x10] sm:$0xff]  ;;  %v48_v6 = vld [vmem:[#allocation2 + $0x18] sm:$0xff]  ;;  %v65_v8 = vand.u32 4294901760, %v46_v3 }
  0x16   :  { %34 = vperm.xlu0 %1383, %v1513_v1   ;;  %v62_v4 = vand.u32 4294901760, %v45_v2  ;;  %v1519_v7 = vld [vmem:[%s1816_s0 + $0x8] sm:$0xff]  ;;  %v68_v9 = vand.u32 4294901760, %v47_v5  ;;  %v71_v10 = vand.u32 4294901760, %v48_v6  ;;  %v49_v11 = vld [vmem:[#allocation2 + $0x20] sm:$0xff]  ;;  %v51_v17 = vld [vmem:[#allocation2 + $0x30] sm:$0xff] }
  0x17   :  { %v50_v12 = vld [vmem:[#allocation2 + $0x28] sm:$0xff]  ;;  %v74_v15 = vand.u32 4294901760, %v49_v11  ;;  %v52_v18 = vld [vmem:[#allocation2 + $0x38] sm:$0xff]  ;;  %v80_v20 = vand.u32 4294901760, %v51_v17  ;;  %v53_v22 = vld [vmem:[#allocation2 + $0x40] sm:$0xff]  ;;  %v1572_v46 = vsub.f32 %v46_v3, %v65_v8  ;;  %s1473_s0 = smov [#allocation5]  }
  0x18   :  { %v1521_v13 = vpack.c.bf16 %v65_v8, %v62_v4  ;;  %v1523_v14 = vpack.c.bf16 %v71_v10, %v68_v9  ;;  %v77_v16 = vand.u32 4294901760, %v50_v12  ;;  %v83_v21 = vand.u32 4294901760, %v52_v18  ;;  %v54_v23 = vld [vmem:[#allocation2 + $0x48] sm:$0xff]  ;;  %v1540_v28 = vld [vmem:[#allocation2 + $0x50] sm:$0xff]  ;;  %v1548_v32 = vld [vmem:[#allocation2 + $0x58] sm:$0xff]  ;;  %s818_s1 = sshll.u32 %s1473_s0, 4  ;;  %s819_s1 = int_to_ptr.vmem [resolvable:$true] %s818_s1 }
  0x19   :  { %v1534_v24 = vsub.f32 %v47_v5, %v68_v9  ;;  %v1536_v25 = vsub.f32 %v48_v6, %v71_v10  ;;  %v86_v26 = vand.u32 4294901760, %v53_v22  ;;  %v89_v27 = vand.u32 4294901760, %v54_v23  ;;  %v1564_v41 = vld [vmem:[#allocation2 + $0x60] sm:$0xff]  ;;  %v1568_v44 = vld [vmem:[#allocation2 + $0x68] sm:$0xff]  ;;  %v1592_v58 = vld [vmem:[#allocation2 + $0x70] sm:$0xff]  ;;  %s1416_s30 = scalar_lea.vmem %s819_s1, 256  ;;  %p1421_p9 = scmp.lt.s32.totalorder %s819_s1, %s819_s1 }
  0x1a   :  { %37 = vperm.xlu0 %1383, %v1519_v7   ;;  %1267 = vmatprep.subr.bf16.mxu0 %v1521_v13  ;;  %v1532_v19 = vpack.c.bf16 %v77_v16, %v74_v15  ;;  %v1546_v31 = vpack.c.bf16 %v83_v21, %v80_v20  ;;  %v92_v36 = vand.u32 4294901760, %v1540_v28  ;;  %v1555_v37 = vsub.f32 %v49_v11, %v74_v15  ;;  %v60_v61 = vld [vmem:[#allocation2 + $0x78] sm:$0xff]  ;;  %p1417_p8 = scmp.ne.s32.totalorder %s819_s1, %s1416_s30  ;;  %p1422_p10 = scmp.lt.s32.totalorder %s1416_s30, %s1416_s30 }
  0x1b   :  { %1171 = vmatprep.subr.bf16.mxu1 %v1521_v13  ;;  %1269 = vmatpush3.bf16.msra.mxu0 %v1521_v13  ;;  %v179_v29 = vand.u32 4294901760, %v1534_v24  ;;  %v186_v30 = vand.u32 4294901760, %v1536_v25  ;;  %v1557_v38 = vsub.f32 %v50_v12, %v77_v16  ;;  %v1561_v39 = vpack.c.bf16 %v89_v27, %v86_v26 }
  0x1c   :  { %1173 = vmatpush3.bf16.msra.mxu1 %v1521_v13  ;;  %1271 = vmatprep.subr.bf16.mxu0 %v1523_v14  ;;  %v95_v40 = vand.u32 4294901760, %v1548_v32  ;;  %v1570_v45 = vsub.f32 %v45_v2, %v62_v4  ;;  %v193_v47 = vand.u32 4294901760, %v1555_v37  ;;  %v1578_v50 = vsub.f32 %v51_v17, %v80_v20  ;;  %p1423_p11 = por %p1422_p10, %p1421_p9 }
  0x1d   :  { %1175 = vmatprep.subr.bf16.mxu1 %v1523_v14  ;;  %v1550_v33 = vpack.c.bf16 %v186_v30, %v179_v29  ;;  %v180_v34 = vsub.f32 %v1534_v24, %v179_v29  ;;  %v187_v35 = vsub.f32 %v1536_v25, %v186_v30  ;;  %v200_v48 = vand.u32 4294901760, %v1557_v38 }
  0x1e   :  { %v1580_v51 = vsub.f32 %v52_v18, %v83_v21  ;;  %v98_v52 = vand.u32 4294901760, %v1564_v41  ;;  %v194_v54 = vsub.f32 %v1555_v37, %v193_v47  ;;  %v1589_v56 = vpack.c.bf16 %v95_v40, %v92_v36  ;;  %p1424_p12 = pnand %p1423_p11, %p1417_p8 }
  0x1f   :  { %1273 = vmatpush3.bf16.msra.mxu0 %v1523_v14  ;;  %v181_v42 = vand.u32 4294901760, %v180_v34  ;;  %v188_v43 = vand.u32 4294901760, %v187_v35  ;;  %v1583_v53 = vpack.c.bf16 %v200_v48, %v193_v47  ;;  %v201_v55 = vsub.f32 %v1557_v38, %v200_v48 }
  0x20   :  { %1177 = vmatpush3.bf16.msra.mxu1 %v1523_v14  ;;  %1275 = vmatprep.subr.bf16.mxu0 %v1532_v19  ;;  %v101_v57 = vand.u32 4294901760, %v1568_v44  ;;  %v207_v59 = vand.u32 4294901760, %v1578_v50  ;;  %v214_v60 = vand.u32 4294901760, %v1580_v51  ;;  %v165_v62 = vand.u32 4294901760, %v1570_v45 }
  0x21   :  { %1179 = vmatprep.subr.bf16.mxu1 %v1532_v19  ;;  %v1576_v49 = vpack.c.bf16 %v188_v43, %v181_v42  ;;  %v172_v63 = vand.u32 4294901760, %v1572_v46  ;;  %v195_v0 = vand.u32 4294901760, %v194_v54  ;;  %v202_v2 = vand.u32 4294901760, %v201_v55 }
  0x22   :  { %v1600_v3 = vpack.c.bf16 %v214_v60, %v207_v59  ;;  %v208_v4 = vsub.f32 %v1578_v50, %v207_v59  ;;  %v215_v5 = vsub.f32 %v1580_v51, %v214_v60  ;;  %v1604_v6 = vsub.f32 %v53_v22, %v86_v26 }
  0x23   :  { %1277 = vmatpush3.bf16.msra.mxu0 %v1532_v19  ;;  %v104_v8 = vand.u32 4294901760, %v1592_v58  ;;  %v1607_v9 = vpack.c.bf16 %v202_v2, %v195_v0  ;;  %v1609_v10 = vsub.f32 %v54_v23, %v89_v27  ;;  %v107_v11 = vand.u32 4294901760, %v60_v61 }
  0x24   :  { %1181 = vmatpush3.bf16.msra.mxu1 %v1532_v19  ;;  %1279 = vmatprep.subr.bf16.mxu0 %v1546_v31  ;;  %v209_v12 = vand.u32 4294901760, %v208_v4  ;;  %v216_v15 = vand.u32 4294901760, %v215_v5  ;;  %v221_v16 = vand.u32 4294901760, %v1604_v6  ;;  %v1616_v17 = vpack.c.bf16 %v101_v57, %v98_v52 }
  0x25   :  { %1183 = vmatprep.subr.bf16.mxu1 %v1546_v31  ;;  %v166_v18 = vsub.f32 %v1570_v45, %v165_v62  ;;  %v173_v20 = vsub.f32 %v1572_v46, %v172_v63  ;;  %v228_v21 = vand.u32 4294901760, %v1609_v10  ;;  %v234_v26 = vsub.f32 %v1540_v28, %v92_v36 }
  0x26   :  { %v1621_v22 = vpack.c.bf16 %v216_v15, %v209_v12  ;;  %v222_v23 = vsub.f32 %v1604_v6, %v221_v16  ;;  %v241_v27 = vsub.f32 %v1548_v32, %v95_v40  ;;  %v1633_v43 = vpack.c.bf16 %v107_v11, %v104_v8 }
  0x27   :  { %1281 = vmatpush3.bf16.msra.mxu0 %v1546_v31  ;;  %v1626_v29 = vpack.c.bf16 %v228_v21, %v221_v16  ;;  %v229_v30 = vsub.f32 %v1609_v10, %v228_v21  ;;  %v235_v35 = vand.u32 4294901760, %v234_v26  ;;  %v167_v28 = vand.u32 4294901760, %v166_v18 }
  0x28   :  { %1185 = vmatpush3.bf16.msra.mxu1 %v1546_v31  ;;  %1283 = vmatprep.subr.bf16.mxu0 %v1561_v39  ;;  %v223_v34 = vand.u32 4294901760, %v222_v23  ;;  %v242_v42 = vand.u32 4294901760, %v241_v27  ;;  %v174_v36 = vand.u32 4294901760, %v173_v20  ;;  %v248_v54 = vsub.f32 %v1564_v41, %v98_v52 }
  0x29   :  { %1187 = vmatprep.subr.bf16.mxu1 %v1561_v39  ;;  %v230_v32 = vand.u32 4294901760, %v229_v30  ;;  %v236_v47 = vsub.f32 %v234_v26, %v235_v35  ;;  %v255_v59 = vsub.f32 %v1568_v44, %v101_v57  ;;  %v1298_v4 = vpack.c.bf16 %v172_v63, %v165_v62 }
  0x2a   :  { %v1635_v40 = vpack.c.bf16 %v242_v42, %v235_v35  ;;  %v243_v48 = vsub.f32 %v241_v27, %v242_v42  ;;  %v249_v2 = vand.u32 4294901760, %v248_v54  ;;  %v1202_v5 = vpack.c.bf16 %v174_v36, %v167_v28 }
  0x2b   :  { %1285 = vmatpush3.bf16.msra.mxu0 %v1561_v39  ;;  %v1638_v55 = vpack.c.bf16 %v230_v32, %v223_v34  ;;  %v237_v60 = vand.u32 4294901760, %v236_v47  ;;  %v256_v12 = vand.u32 4294901760, %v255_v59  ;;  %v262_v52 = vsub.f32 %v1592_v58, %v104_v8 }
  0x2c   :  { %1189 = vmatpush3.bf16.msra.mxu1 %v1561_v39  ;;  %1287 = vmatprep.subr.bf16.mxu0 %v1589_v56  ;;  %v244_v0 = vand.u32 4294901760, %v243_v48  ;;  %v250_v41 = vsub.f32 %v248_v54, %v249_v2  ;;  %v269_v44 = vsub.f32 %v60_v61, %v107_v11  ;;  %v1660_v11 = vpack.c.bf16 %v1572_v46, %v1570_v45 }
  0x2d   :  { %1191 = vmatprep.subr.bf16.mxu1 %v1589_v56  ;;  %v1648_v57 = vpack.c.bf16 %v256_v12, %v249_v2  ;;  %v257_v16 = vsub.f32 %v255_v59, %v256_v12  ;;  %v263_v20 = vand.u32 4294901760, %v262_v52  ;;  %v1664_v35 = vpack.c.bf16 %v1536_v25, %v1534_v24 }
  0x2e   :  { %v1645_v15 = vpack.c.bf16 %v244_v0, %v237_v60  ;;  %v251_v18 = vand.u32 4294901760, %v250_v41  ;;  %v270_v21 = vand.u32 4294901760, %v269_v44  ;;  %v1668_v42 = vpack.c.bf16 %v1557_v38, %v1555_v37 }
  0x2f   :  { %1289 = vmatpush3.bf16.msra.mxu0 %v1589_v56  ;;  %v258_v62 = vand.u32 4294901760, %v257_v16  ;;  %v264_v23 = vsub.f32 %v262_v52, %v263_v20  ;;  %v1672_v28 = vpack.c.bf16 %v1580_v51, %v1578_v50  ;;  %v1676_v36 = vpack.c.bf16 %v1609_v10, %v1604_v6 }
  0x30   :  { %1193 = vmatpush3.bf16.msra.mxu1 %v1589_v56  ;;  %1291 = vmatprep.subr.bf16.mxu0 %v1616_v17  ;;  %v1652_v63 = vpack.c.bf16 %v270_v21, %v263_v20  ;;  %v271_v30 = vsub.f32 %v269_v44, %v270_v21  ;;  %v1678_v32 = vpack.c.bf16 %v241_v27, %v234_v26  ;;  %v1470_v24 = vmov 1  }
  0x31   :  { %1195 = vmatprep.subr.bf16.mxu1 %v1616_v17  ;;  %v1654_v34 = vpack.c.bf16 %v258_v62, %v251_v18  ;;  %v265_v58 = vand.u32 4294901760, %v264_v23  ;;  %v1680_v45 = vpack.c.bf16 %v255_v59, %v248_v54  ;;  %v1682_v46 = vpack.c.bf16 %v269_v44, %v262_v52  ;;  %1384 = vset.pattern.permute.xlu0 %v1470_v24 }
  0x32   :  { %v272_v61 = vand.u32 4294901760, %v271_v30  ;;  %1385 = vset.pattern.permute.xlu1 %v1470_v24  ;;  %768 = vperm.xlu0 %1384, %v1513_v1   ;;  %v31_v25 = vlaneseq  ;;  %v1471_v50 = vmov 0.0   ;;  %v1472_v60 = vmov 1.0  }
  0x33   :  { %1293 = vmatpush3.bf16.msra.mxu0 %v1616_v17 }
  0x34   :  { %1197 = vmatpush3.bf16.msra.mxu1 %v1616_v17  ;;  %1295 = vmatprep.subr.bf16.mxu0 %v1633_v43  ;;  %v1656_v8 = vpack.c.bf16 %v272_v61, %v265_v58  ;;  %v1686_v37 = vand.u32 127, %v31_v25 }
  0x35   :  { %1199 = vmatprep.subr.bf16.mxu1 %v1633_v43 }
  0x37   :  { %1297 = vmatpush3.bf16.msra.mxu0 %v1633_v43 }
  0x38   :  { %1201 = vmatpush3.bf16.msra.mxu1 %v1633_v43  ;;  %1299 = vmatprep.subr.bf16.mxu0 %v1298_v4 }
  0x39   :  { %1203 = vmatprep.subr.bf16.mxu1 %v1202_v5 }
  0x95   :  { %v35_v38 = vpop.permute.xlu0 %34 }
  0x96   :  { %vm39_vm0 = vcmp.eq.s32.totalorder %v1686_v37, %v35_v38 }
  0x97   :  { %v844_v51 = vsel %vm39_vm0, 1.0, %v1471_v50 }
  0x98   :  { %v143_v6 = vsub.f32 %v844_v51, %v844_v51 }
  0x99   :  { %v1691_v10 = vpop.permute.xlu0 %37 }
  0x9a   :  { %vm40_vm1 = vcmp.eq.s32.totalorder %v1686_v37, %v1691_v10  ;;  %v144_v26 = vand.u32 4294901760, %v143_v6 }
  0x9b   :  { %v845_v1 = vsel %vm40_vm1, 1.0, %v1471_v50 }
  0x9c   :  { %v1698_v27 = vsub.f32 %v845_v1, %v845_v1  ;;  %1097 = vmatprep.mubr.f32.mxu0 %v144_v26  ;;  %v145_v47 = vsub.f32 %v143_v6, %v144_v26 }
  0x9e   :  { %v146_v48 = vand.u32 4294901760, %v145_v47  ;;  %v154_v54 = vand.u32 4294901760, %v1698_v27 }
  0xa0   :  { %992 = vmatprep.mubr.f32.mxu1 %v146_v48  ;;  %1098 = vmatmul.mubr.f32.vlgmr.msra.gmra.mrb[0].mxu0 %v154_v54  ;;  %v155_v59 = vsub.f32 %v1698_v27, %v154_v54 }
  0xa1   :  { %1301 = vmatpush3.bf16.msra.mxu0 %v1298_v4  ;;  %1132 = vmatprep.mubr.msk.f32.mxu0 %vm39_vm0, %v1472_v60 }
  0xa2   :  { %1303 = vmatprep.subr.bf16.mxu0 %v1550_v33  ;;  %v156_v0 = vand.u32 4294901760, %v155_v59 }
  0xa4   :  { %993 = vmatmul.mubr.f32.vlgmr.msra.gmra.mrb[0].mxu1 %v156_v0 }
  0xa5   :  { %1205 = vmatpush3.bf16.msra.mxu1 %v1202_v5  ;;  %1305 = vmatpush3.bf16.msra.mxu0 %v1550_v33 }
  0xa6   :  { %1027 = vmatprep.mubr.msk.f32.mxu1 %vm39_vm0, %v1472_v60  ;;  %1207 = vmatprep.subr.bf16.mxu1 %v1576_v49 }
  0xa7   :  { %1307 = vmatprep.subr.bf16.mxu0 %v1583_v53 }
  0xa9   :  { %1209 = vmatpush3.bf16.msra.mxu1 %v1576_v49  ;;  %1309 = vmatpush3.bf16.msra.mxu0 %v1583_v53 }
  0xaa   :  { %1211 = vmatprep.subr.bf16.mxu1 %v1607_v9  ;;  %1311 = vmatprep.subr.bf16.mxu0 %v1600_v3 }
  0xad   :  { %1213 = vmatpush3.bf16.msra.mxu1 %v1607_v9  ;;  %1313 = vmatpush3.bf16.msra.mxu0 %v1600_v3 }
  0xae   :  { %1215 = vmatprep.subr.bf16.mxu1 %v1621_v22  ;;  %1315 = vmatprep.subr.bf16.mxu0 %v1626_v29 }
  0xb1   :  { %1217 = vmatpush3.bf16.msra.mxu1 %v1621_v22  ;;  %1317 = vmatpush3.bf16.msra.mxu0 %v1626_v29  ;;  %v769_v29 = vpop.permute.xlu0 %768 }
  0xb2   :  { %1219 = vmatprep.subr.bf16.mxu1 %v1638_v55  ;;  %1319 = vmatprep.subr.bf16.mxu0 %v1635_v40  ;;  %vm773_vm2 = vcmp.eq.s32.totalorder %v1686_v37, %v769_v29 }
  0xb5   :  { %1221 = vmatpush3.bf16.msra.mxu1 %v1638_v55  ;;  %1321 = vmatpush3.bf16.msra.mxu0 %v1635_v40 }
  0xb6   :  { %1223 = vmatprep.subr.bf16.mxu1 %v1645_v15  ;;  %1323 = vmatprep.subr.bf16.mxu0 %v1648_v57 }
  0xb9   :  { %1225 = vmatpush3.bf16.msra.mxu1 %v1645_v15  ;;  %1325 = vmatpush3.bf16.msra.mxu0 %v1648_v57 }
  0xba   :  { %1227 = vmatprep.subr.bf16.mxu1 %v1654_v34  ;;  %1327 = vmatprep.subr.bf16.mxu0 %v1652_v63 }
  0xbd   :  { %1229 = vmatpush3.bf16.msra.mxu1 %v1654_v34  ;;  %1329 = vmatpush3.bf16.msra.mxu0 %v1652_v63 }
  0xbe   :  { %1231 = vmatprep.subr.bf16.mxu1 %v1656_v8  ;;  %1331 = vmatprep.subr.bf16.mxu0 %v1521_v13 }
  0xc0   :  { %1133 = vmatmul.mubr.msk.f32.vlgmr.msra.gmra.mrb[0].mxu0 %vm40_vm1, %v1472_v60 }
  0xc1   :  { %1233 = vmatpush3.bf16.msra.mxu1 %v1656_v8  ;;  %1333 = vmatpush3.bf16.msra.mxu0 %v1521_v13 }
  0xc2   :  { %1167 = vmatprep.mubr.msk.f32.mxu0 %vm39_vm0, %v1472_v60  ;;  %1235 = vmatprep.subr.bf16.mxu1 %v1660_v11 }
  0xc3   :  { %1335 = vmatprep.subr.bf16.mxu0 %v1523_v14 }
  0xc4   :  { %1028 = vmatmul.mubr.msk.f32.vlgmr.msra.gmra.mrb[0].mxu1 %vm40_vm1, %v1472_v60 }
  0xc5   :  { %1237 = vmatpush3.bf16.msra.mxu1 %v1660_v11  ;;  %1062 = vmatprep.mubr.f32.mxu1 %v143_v6 }
  0xc6   :  { %1337 = vmatpush3.bf16.msra.mxu0 %v1523_v14  ;;  %1239 = vmatprep.subr.bf16.mxu1 %v1664_v35 }
  0xc7   :  { %1339 = vmatprep.subr.bf16.mxu0 %v1532_v19 }
  0xc9   :  { %1241 = vmatpush3.bf16.msra.mxu1 %v1664_v35 }
  0xca   :  { %1341 = vmatpush3.bf16.msra.mxu0 %v1532_v19  ;;  %1243 = vmatprep.subr.bf16.mxu1 %v1668_v42 }
  0xcb   :  { %1343 = vmatprep.subr.bf16.mxu0 %v1546_v31 }
  0xcd   :  { %1245 = vmatpush3.bf16.msra.mxu1 %v1668_v42 }
  0xce   :  { %1345 = vmatpush3.bf16.msra.mxu0 %v1546_v31  ;;  %1247 = vmatprep.subr.bf16.mxu1 %v1672_v28 }
  0xcf   :  { %1347 = vmatprep.subr.bf16.mxu0 %v1561_v39 }
  0xd1   :  { %1249 = vmatpush3.bf16.msra.mxu1 %v1672_v28 }
  0xd2   :  { %1349 = vmatpush3.bf16.msra.mxu0 %v1561_v39  ;;  %1251 = vmatprep.subr.bf16.mxu1 %v1676_v36 }
  0xd3   :  { %1351 = vmatprep.subr.bf16.mxu0 %v1589_v56 }
  0xd5   :  { %1253 = vmatpush3.bf16.msra.mxu1 %v1676_v36 }
  0xd6   :  { %1353 = vmatpush3.bf16.msra.mxu0 %v1589_v56  ;;  %1255 = vmatprep.subr.bf16.mxu1 %v1678_v32 }
  0xd7   :  { %1355 = vmatprep.subr.bf16.mxu0 %v1616_v17 }
  0xd9   :  { %1257 = vmatpush3.bf16.msra.mxu1 %v1678_v32 }
  0xda   :  { %1357 = vmatpush3.bf16.msra.mxu0 %v1616_v17  ;;  %1259 = vmatprep.subr.bf16.mxu1 %v1680_v45 }
  0xdb   :  { %1359 = vmatprep.subr.bf16.mxu0 %v1633_v43 }
  0xdd   :  { %1261 = vmatpush3.bf16.msra.mxu1 %v1680_v45 }
  0xde   :  { %1361 = vmatpush3.bf16.msra.mxu0 %v1633_v43  ;;  %1263 = vmatprep.subr.bf16.mxu1 %v1682_v46 }
  0xe1   :  { %1168 = vmatmul.mubr.msk.f32.vlgmr.msra.gmra.mrb[0].mxu0 %vm40_vm1, %v1472_v60  ;;  %1265 = vmatpush3.bf16.msra.mxu1 %v1682_v46 }
  0xe4   :  { %1063 = vmatmul.mubr.f32.vlgmr.msra.gmra.mrb[0].mxu1 %v1698_v27 }
 0x1b4   :  { %v1169_v13 = vpop.f32.mrb[0].mxu0 }
 0x1b5   :  { %v735_v14 = vpop.f32.mrb[1].mxu0 }
 0x1b7   :  { %v1064_v19 = vpop.f32.mrb[0].mxu1 }
 0x1b8   :  { %v1362_v31 = vadd.f32 %v1169_v13, %v1064_v19  ;;  %v419_v33 = vpop.f32.mrb[1].mxu1 }
 0x1b9   :  { %v1363_v39 = vadd.f32 %v735_v14, %v419_v33 }
 0x1ba   :  { %746 = vst [vmem:[#allocation5 + $0x8] sm:$0xff] %v1362_v31  ;;  %749 = vmax.xlane.f32.xlu1 %v1362_v31 }
 0x1bb   :  { %745 = vst [vmem:[#allocation5] sm:$0xff] %v1363_v39  ;;  %v775_v55 = vsel %vm773_vm2, %v1363_v39, 0.0 }
 0x1be   :  { %747 = vmax.xlane.f32.xlu1 %v1363_v39 }
 0x1cf   :  { %771 = vperm.xlu1 %1385, %v1519_v7  }
 0x247   :  { %v750_v49 = vpop.xlane.xlu1 %749 }
 0x248   :  { %v752_v53 = vsub.f32 %v1362_v31, %v750_v49 }
 0x24a   :  { %v755_v56 = vmul.f32 1.442695, %v752_v53 }
 0x24b   :  { %v748_v3 = vpop.xlane.xlu1 %747 }
 0x24c   :  { %1386 = vpow2.f32 %v755_v56  ;;  %v751_v9 = vsub.f32 %v1363_v39, %v748_v3 }
 0x24e   :  { %v753_v17 = vmul.f32 1.442695, %v751_v9 }
 0x24f   :  { %v772_v40 = vpop.permute.xlu1 %771 }
 0x250   :  { %1388 = vpow2.f32 %v753_v17  ;;  %vm774_vm3 = vcmp.eq.s32.totalorder %v1686_v37, %v772_v40 }
 0x251   :  { %v776_v7 = vsel %vm774_vm3, %v1362_v31, 0.0 }
 0x256   :  { %v1387_v22 = vpop.eup %1386 }
 0x257   :  { %759 = vadd.xlane.f32.xlu1 %v1387_v22 }
 0x25a   :  { %v1389_v43 = vpop.eup %1388 }
 0x25b   :  { %757 = vadd.xlane.f32.xlu0 %v1389_v43 }
 0x25f   :  { %777 = vadd.xlane.f32.xlu0 %v775_v55 }
 0x263   :  { %779 = vadd.xlane.f32.xlu0 %v776_v7 }
 0x2e4   :  { %v760_v2 = vpop.xlane.xlu1 %759 }
 0x2e5   :  { %1390 = vlog2.f32 %v760_v2 }
 0x2e8   :  { %v758_v4 = vpop.xlane.xlu0 %757 }
 0x2e9   :  { %1392 = vlog2.f32 %v758_v4 }
 0x2ec   :  { %v778_v12 = vpop.xlane.xlu0 %777 }
 0x2ef   :  { %v1391_v5 = vpop.eup %1390 }
 0x2f0   :  { %v764_v15 = vmul.f32 0.6931472, %v1391_v5  ;;  %v780_v57 = vpop.xlane.xlu0 %779 }
 0x2f2   :  { %v766_v41 = vadd.f32 %v764_v15, %v750_v49 }
 0x2f3   :  { %v1393_v52 = vpop.eup %1392 }
 0x2f4   :  { %v762_v44 = vmul.f32 0.6931472, %v1393_v52  ;;  %v791_v18 = vsub.f32 %v766_v41, %v780_v57 }
 0x2f6   :  { %v765_v16 = vadd.f32 %v762_v44, %v748_v3  ;;  %v796_v62 = vsel %vm794_vm4, %v791_v18, 0.0 }
 0x2f8   :  { %v790_v20 = vsub.f32 %v765_v16, %v778_v12 }
 0x2fa   :  { %v795_v21 = vsel %vm794_vm4, %v790_v20, 0.0 }
 0x2fb   :  { %v797_v63 = vadd.f32 %v796_v62, %v795_v21 }
 0x2fd   :  { %798 = vadd.xlane.f32.xlu0 %v797_v63 }
 0x2fe   :  { %1427 = shalt.err (!%p1424_p12)
}
 0x2ff   :  { %s1428_s6 = scalar_lea.hbm %s1818_s2, 256 }
 0x300   :  { %p1429_p13 = scmp.ne.s32.totalorder %s1818_s2, %s1428_s6  ;;  %p1432_p0 = scmp.lt.u32.totalorder %s1428_s6, %s1818_s2 }
 0x302   :  { %p1434_p1 = pnand %p1432_p0, %p1429_p13 }
 0x304   :  { %1437 = shalt.err (!%p1434_p1)
}
 0x305   :  { %824 = dma.vmem_to_hbm [thread:$0]  %s819_s1, 256, %s1818_s2, [#allocation4], %s1467_s22, %s1467_s22, %s1468_s23   ;;  %v783_v35 = vshrl.u32 %v31_v25, 7  ;;  %vm808_vm6 = vcmp.eq.s32.totalorder %v1686_v37, 0 }
 0x306   :  { %s1474_s13 = smov [#allocation6]  }
 0x307   :  { %vm807_vm5 = vcmp.eq.s32.totalorder %v783_v35, 0  ;;  %s831_s14 = sshll.u32 %s1474_s13, 4  ;;  %s832_s14 = int_to_ptr.vmem [resolvable:$true] %s831_s14 }
 0x308   :  { %vm809_vm7 = vmand %vm807_vm5, %vm808_vm6  ;;  %s1438_s2 = scalar_lea.vmem %s832_s14, 128  ;;  %p1443_p3 = scmp.lt.s32.totalorder %s832_s14, %s832_s14 }
 0x309   :  { %p1439_p2 = scmp.ne.s32.totalorder %s832_s14, %s1438_s2  ;;  %p1444_p4 = scmp.lt.s32.totalorder %s1438_s2, %s1438_s2 }
 0x30b   :  { %p1445_p5 = por %p1444_p4, %p1443_p3 }
 0x30d   :  { %p1446_p6 = pnand %p1445_p5, %p1439_p2 }
 0x38a   :  { %v799_v23 = vpop.xlane.xlu0 %798 }
 0x38b   :  { %v800_v30 = vrot.slane %v799_v23, 4 }
 0x38d   :  { %v801_v34 = vadd.f32 %v800_v30, %v799_v23 }
 0x38f   :  { %v802_v58 = vrot.slane %v801_v34, 2 }
 0x391   :  { %v803_v61 = vadd.f32 %v802_v58, %v801_v34 }
 0x393   :  { %v804_v8 = vrot.slane %v803_v61, 1 }
 0x395   :  { %v805_v11 = vadd.f32 %v804_v8, %v803_v61 }
 0x397   :  { %1372 = vpush %v805_v11 }
 0x3c8   :  { %s1373_s15 = spop %1372 }
 0x3c9   :  { %v810_v42 = vstv %s1373_s15 }
 0x3ca   :  { %v811_v28 = vsel %vm809_vm7, %v810_v42, 0.0 }
 0x3cb   :  { %812 = vst [vmem:[#allocation6] sm:$0xff] %v811_v28 }
 0x3cc   :  { %1449 = shalt.err (!%p1446_p6)
}
 0x3cd   :  { %s1450_s18 = scalar_lea.hbm %s1819_s3, 128 }
 0x3ce   :  { %p1451_p7 = scmp.ne.s32.totalorder %s1819_s3, %s1450_s18  ;;  %p1454_p8 = scmp.lt.u32.totalorder %s1450_s18, %s1819_s3 }
 0x3d0   :  { %p1456_p9 = pnand %p1454_p8, %p1451_p7 }
 0x3d2   :  { %1459 = shalt.err (!%p1456_p9)
}
 0x3d3   :  { %834 = dma.vmem_to_hbm [thread:$0]  %s832_s14, 128, %s1819_s3, [#allocation7]  }
 0x3d4   :  { %1462 = dma.done.wait [#allocation4], 256  }
 0x3d5   :  { %1463 = vsyncadd [#allocation4], 4294967040 }
 0x3d6   :  { %1464 = dma.done.wait [#allocation7], 128  }
 0x3d7   :  { %1465 = vsyncadd [#allocation7], 4294967168 }
 0x3d8   :  { %841 = vsyncpa [#allocation3], 1 }
 0x3d9   :  { %842 = vsyncpa [#allocation4], 1 }
 0x3da   :  { %843 = vsyncpa [#allocation7], 1 }

</bundles_post_ra>
